<compile_context>
chip_gen: v7x
topology: tpu7x:2x2x1
jax: 0.10.0
libtpu: 0.0.40
codegen_flags: <defaults>
</compile_context>

<pallas_src>
import functools

import jax
import jax.numpy as jnp
from jax.experimental import pallas as pl
from jax.experimental.pallas import tpu as pltpu


def _se_kernel(x_ref, w1_ref, b1_ref, w2_ref, b2_ref, o_ref, *, inv_hw):
    # x block: (TB, C, HW)   w1: (Cr, C)  b1: (1, Cr)   w2: (C, Cr)  b2: (1, C)
    x = x_ref[...]                                              # native dtype

    # --- squeeze: global average pool, f32 accumulation ---------------------
    pooled = jnp.sum(x, axis=-1, dtype=jnp.float32) * inv_hw    # (TB, C) f32

    # --- excitation: two tiny 1x1 convs == per-sample matvecs on the VPU ----
    # C / C//r are far below MXU tile sizes, so broadcast+reduce beats padding
    # out a matmul; keep every intermediate >= 2-D (no 1-D relayouts).
    w1 = w1_ref[...].astype(jnp.float32)                        # (Cr, C)
    w2 = w2_ref[...].astype(jnp.float32)                        # (C, Cr)
    h = jnp.sum(pooled[:, None, :] * w1[None, :, :], axis=-1) + b1_ref[...]  # (TB, Cr)
    h = jnp.maximum(h, 0.0)
    s = jnp.sum(h[:, None, :] * w2[None, :, :], axis=-1) + b2_ref[...]       # (TB, C)
    s = jax.nn.sigmoid(s)

    # --- scale: x * y.expand_as(x), in the native dtype ---------------------
    o_ref[...] = x * s.astype(x.dtype)[:, :, None]


def _choose_tb(batch, per_sample_bytes, target_bytes=2 << 20):
    """Largest divisor of `batch` whose block is <= ~2 MiB, keeping >= 2 grid
    steps (so both v7x TensorCores get work) whenever batch >= 2."""
    cap = max(1, target_bytes // max(1, per_sample_bytes))
    if batch >= 2:
        cap = min(cap, max(1, batch // 2))
    tb = 1
    for d in range(1, batch + 1):
        if batch % d == 0 and d <= cap:
            tb = d
    return tb


def se_layer(x, w1, b1, w2, b2):
    """x: (B, C, H, W). Returns (B, C, H, W). Matches PyTorch SELayer.forward."""
    B, C, H, W = x.shape
    HW = H * W
    x2 = x.reshape(B, C, HW)        # free reshape; no padding / extra HBM pass

    itemsize = jnp.dtype(x.dtype).itemsize
    tb = _choose_tb(B, C * HW * itemsize)
    grid = (B // tb,)

    # in + out blocks are each double-buffered (~4x block bytes), plus weights
    # and compiler scratch headroom.
    block_bytes = tb * C * HW * itemsize
    try:
        vmem_cap = int(pltpu.get_tpu_info().vmem_capacity_bytes)
    except Exception:
        vmem_cap = 64 << 20         # v7x per-TC floor; safe on v5e/v6e too
    vmem_limit = int(min(int(vmem_cap * 0.9), max(16 << 20, 6 * block_bytes)))

    kernel = functools.partial(_se_kernel, inv_hw=1.0 / HW)

    out = pl.pallas_call(
        kernel,
        out_shape=jax.ShapeDtypeStruct((B, C, HW), x.dtype),
        grid_spec=pltpu.PrefetchScalarGridSpec(
            num_scalar_prefetch=0,
            grid=grid,
            in_specs=[
                pl.BlockSpec((tb, C, HW), lambda i: (i, 0, 0)),
                pl.BlockSpec(w1.shape, lambda i: (0, 0)),
                pl.BlockSpec(b1.shape, lambda i: (0, 0)),
                pl.BlockSpec(w2.shape, lambda i: (0, 0)),
                pl.BlockSpec(b2.shape, lambda i: (0, 0)),
            ],
            out_specs=pl.BlockSpec((tb, C, HW), lambda i: (i, 0, 0)),
        ),
        compiler_params=pltpu.CompilerParams(
            dimension_semantics=("parallel",),
            vmem_limit_bytes=vmem_limit,
        ),
    )(x2, w1, b1, w2, b2)

    return out.reshape(B, C, H, W)


def se_layer_ref(x, w1, b1, w2, b2):
    """Plain-JAX reference matching PyTorch SELayer.forward."""
    pooled = jnp.mean(x, axis=(2, 3))                               # (B, C)
    h = jnp.maximum(pooled @ w1.T + b1[0], 0.0)                     # (B, Cr)
    s = jax.nn.sigmoid(h @ w2.T + b2[0])                            # (B, C)
    return x * s[:, :, None, None]


if __name__ == "__main__":
    B, C, H, W = 2, 4, 16, 16
    reduction = 2
    Cr = C // reduction

    key = jax.random.PRNGKey(0)
    kx, k1, k2, k3, k4 = jax.random.split(key, 5)

    x = jax.random.normal(kx, (B, C, H, W), dtype=jnp.float32)
    # 1x1 conv weights (out_ch, in_ch) — kernel_size=1 squeezed out.
    w1 = 0.1 * jax.random.normal(k1, (Cr, C), dtype=jnp.float32)
    b1 = 0.1 * jax.random.normal(k2, (1, Cr), dtype=jnp.float32)
    w2 = 0.1 * jax.random.normal(k3, (C, Cr), dtype=jnp.float32)
    b2 = 0.1 * jax.random.normal(k4, (1, C), dtype=jnp.float32)

    out = se_layer(x, w1, b1, w2, b2)
    out = jax.block_until_ready(out)

    ref = se_layer_ref(x, w1, b1, w2, b2)
    assert out.shape == (B, C, H, W)
    assert jnp.allclose(out, ref, atol=1e-5, rtol=1e-5), "mismatch vs reference"
    print("KERNEL_OK")
</pallas_src>

<mosaic_0001>
module attributes {stable_mosaic.version = 11 : i64} {
  func.func @_se_kernel(%arg0: i32, %arg1: memref<1x4x256xf32, #tpu.memory_space<vmem>>, %arg2: memref<2x4xf32, #tpu.memory_space<vmem>>, %arg3: memref<1x2xf32, #tpu.memory_space<vmem>>, %arg4: memref<4x2xf32, #tpu.memory_space<vmem>>, %arg5: memref<1x4xf32, #tpu.memory_space<vmem>>, %arg6: memref<1x4x256xf32, #tpu.memory_space<vmem>>) attributes {dimension_semantics = [#tpu.dimension_semantics<parallel>], iteration_bounds = array<i64: 2>, scalar_prefetch = 0 : i64, scratch_operands = 0 : i64, tpu.core_type = #tpu.core_type<tc>, window_params = [{transform_indices = @transform_0, window_bounds = array<i64: 1, 4, 256>}, {pipeline_mode = #tpu.pipeline_mode<synchronous>, transform_indices = @transform_1, window_bounds = array<i64: 2, 4>}, {pipeline_mode = #tpu.pipeline_mode<synchronous>, transform_indices = @transform_2, window_bounds = array<i64: 1, 2>}, {pipeline_mode = #tpu.pipeline_mode<synchronous>, transform_indices = @transform_3, window_bounds = array<i64: 4, 2>}, {pipeline_mode = #tpu.pipeline_mode<synchronous>, transform_indices = @transform_4, window_bounds = array<i64: 1, 4>}, {transform_indices = @transform_5, window_bounds = array<i64: 1, 4, 256>}]} {
    %c0 = arith.constant 0 : index
    %c0_0 = arith.constant 0 : index
    %c0_1 = arith.constant 0 : index
    %0 = vector.load %arg1[%c0, %c0_0, %c0_1] : memref<1x4x256xf32, #tpu.memory_space<vmem>>, vector<1x4x256xf32>
    %cst = arith.constant dense<0.000000e+00> : vector<1x4xf32>
    %1 = vector.multi_reduction <add>, %0, %cst [2] : vector<1x4x256xf32> to vector<1x4xf32>
    %cst_2 = arith.constant 3.906250e-03 : f32
    %2 = vector.broadcast %cst_2 : f32 to vector<1x4xf32>
    %3 = arith.mulf %1, %2 : vector<1x4xf32>
    %c0_3 = arith.constant 0 : index
    %c0_4 = arith.constant 0 : index
    %4 = vector.load %arg2[%c0_3, %c0_4] : memref<2x4xf32, #tpu.memory_space<vmem>>, vector<2x4xf32>
    %c0_5 = arith.constant 0 : index
    %c0_6 = arith.constant 0 : index
    %5 = vector.load %arg4[%c0_5, %c0_6] : memref<4x2xf32, #tpu.memory_space<vmem>>, vector<4x2xf32>
    %6 = vector.shape_cast %3 : vector<1x4xf32> to vector<1x1x4xf32>
    %7 = vector.shape_cast %4 : vector<2x4xf32> to vector<1x2x4xf32>
    %8 = vector.broadcast %6 : vector<1x1x4xf32> to vector<1x2x4xf32>
    %9 = arith.mulf %8, %7 : vector<1x2x4xf32>
    %cst_7 = arith.constant dense<0.000000e+00> : vector<1x2xf32>
    %10 = vector.multi_reduction <add>, %9, %cst_7 [2] : vector<1x2x4xf32> to vector<1x2xf32>
    %c0_8 = arith.constant 0 : index
    %c0_9 = arith.constant 0 : index
    %11 = vector.load %arg3[%c0_8, %c0_9] : memref<1x2xf32, #tpu.memory_space<vmem>>, vector<1x2xf32>
    %12 = arith.addf %10, %11 : vector<1x2xf32>
    %cst_10 = arith.constant 0.000000e+00 : f32
    %13 = vector.broadcast %cst_10 : f32 to vector<1x2xf32>
    %14 = arith.maximumf %12, %13 : vector<1x2xf32>
    %15 = vector.shape_cast %14 : vector<1x2xf32> to vector<1x1x2xf32>
    %16 = vector.shape_cast %5 : vector<4x2xf32> to vector<1x4x2xf32>
    %17 = vector.broadcast %15 : vector<1x1x2xf32> to vector<1x4x2xf32>
    %18 = arith.mulf %17, %16 : vector<1x4x2xf32>
    %cst_11 = arith.constant dense<0.000000e+00> : vector<1x4xf32>
    %19 = vector.multi_reduction <add>, %18, %cst_11 [2] : vector<1x4x2xf32> to vector<1x4xf32>
    %c0_12 = arith.constant 0 : index
    %c0_13 = arith.constant 0 : index
    %20 = vector.load %arg5[%c0_12, %c0_13] : memref<1x4xf32, #tpu.memory_space<vmem>>, vector<1x4xf32>
    %21 = arith.addf %19, %20 : vector<1x4xf32>
    %22 = arith.negf %21 : vector<1x4xf32>
    %23 = math.exp %22 : vector<1x4xf32>
    %cst_14 = arith.constant 1.000000e+00 : f32
    %24 = vector.broadcast %cst_14 : f32 to vector<1x4xf32>
    %25 = arith.addf %24, %23 : vector<1x4xf32>
    %26 = arith.divf %24, %25 : vector<1x4xf32>
    %27 = vector.shape_cast %26 : vector<1x4xf32> to vector<1x4x1xf32>
    %28 = vector.broadcast %27 : vector<1x4x1xf32> to vector<1x4x256xf32>
    %29 = arith.mulf %0, %28 : vector<1x4x256xf32>
    %c0_15 = arith.constant 0 : index
    %c0_16 = arith.constant 0 : index
    %c0_17 = arith.constant 0 : index
    %30 = vector.load %arg6[%c0_15, %c0_16, %c0_17] : memref<1x4x256xf32, #tpu.memory_space<vmem>>, vector<1x4x256xf32>
    tpu.vector_store %arg6[%c0_15, %c0_16, %c0_17], %29 {strides = array<i32>} : memref<1x4x256xf32, #tpu.memory_space<vmem>>, vector<1x4x256xf32>,
    return
  }
  func.func @transform_0(%arg0: i32) -> (i32, i32, i32) {
    %c0_i32 = arith.constant 0 : i32
    %c0_i32_0 = arith.constant 0 : i32
    %c0_i32_1 = arith.constant 0 : i32
    return %arg0, %c0_i32, %c0_i32_0 : i32, i32, i32
  }
  func.func @transform_1(%arg0: i32) -> (i32, i32) {
    %c0_i32 = arith.constant 0 : i32
    %c0_i32_0 = arith.constant 0 : i32
    %c0_i32_1 = arith.constant 0 : i32
    return %c0_i32, %c0_i32_0 : i32, i32
  }
  func.func @transform_2(%arg0: i32) -> (i32, i32) {
    %c0_i32 = arith.constant 0 : i32
    %c0_i32_0 = arith.constant 0 : i32
    %c0_i32_1 = arith.constant 0 : i32
    return %c0_i32, %c0_i32_0 : i32, i32
  }
  func.func @transform_3(%arg0: i32) -> (i32, i32) {
    %c0_i32 = arith.constant 0 : i32
    %c0_i32_0 = arith.constant 0 : i32
    %c0_i32_1 = arith.constant 0 : i32
    return %c0_i32, %c0_i32_0 : i32, i32
  }
  func.func @transform_4(%arg0: i32) -> (i32, i32) {
    %c0_i32 = arith.constant 0 : i32
    %c0_i32_0 = arith.constant 0 : i32
    %c0_i32_1 = arith.constant 0 : i32
    return %c0_i32, %c0_i32_0 : i32, i32
  }
  func.func @transform_5(%arg0: i32) -> (i32, i32, i32) {
    %c0_i32 = arith.constant 0 : i32
    %c0_i32_0 = arith.constant 0 : i32
    %c0_i32_1 = arith.constant 0 : i32
    return %arg0, %c0_i32, %c0_i32_0 : i32, i32, i32
  }
}

</mosaic_0001>

<bundles_post_ra>
// kernel: tpu_custom_call.1
= control target key start
LH: loop header
LB: loop body
LE: loop exit
PB: predicated region body
PF: predicated region fallthrough
CT: control target
= control target key end

     0   :  { %10 = vsyncpa [#allocation3], 0  ;;  %s904_s0 = inlined_call_operand.hbm [shape: f32[2,4,256], index: 0, kind: input, shape index: {}]   ;;  %s905_s1 = inlined_call_operand.vmem [shape: f32[2,4], index: 1, kind: input, shape index: {}]   ;;  %s906_s2 = inlined_call_operand.vmem [shape: f32[1,2], index: 2, kind: input, shape index: {}]   ;;  %s907_s3 = inlined_call_operand.vmem [shape: f32[4,2], index: 3, kind: input, shape index: {}]   ;;  %s908_s4 = inlined_call_operand.vmem [shape: f32[1,4], index: 4, kind: input, shape index: {}]   ;;  %s909_s5 = inlined_call_operand.hbm [shape: f32[2,4,256], index: 5, kind: output, shape index: {}]  }
   0x1   :  { %12 = vsyncpa [#allocation3 + $0x1], 0 }
   0x2   :  { %13 = vsyncpa [#allocation4], 0 }
   0x3   :  { %15 = vsyncpa [#allocation4 + $0x1], 0  ;;  %s711_s18 = smov 0   ;;  %s713_s19 = smov 0  }
   0x4   :  { %s715_s20 = smov 0   ;;  %s717_s21 = smov 0  }
   0x5 LB: > { %s732_s22 = sadd.s32 4294967295, %s675_s21   ;;  %s505_s23 = sadd.s32 4294967294, %s675_s21   ;;  %s675_s21 = sphi %s717_s21, %s924_s21   ;;  %s671_s20 = sphi %s715_s20, %s923_s20   ;;  %s667_s19 = sphi %s713_s19, %s922_s19   ;;  %s663_s18 = sphi %s711_s18, %s921_s18  }
   0x6   : > { %s736_s24 = sadd.s32 1, %s675_s21   ;;  %s28_s25 = sadd.s32 1, %s671_s20 }
   0x7   : > { %s25_s26 = ssub.s32 %s675_s21, %s736_s24  ;;  %p35_p0 = scmp.ne.s32.totalorder %s671_s20, %s667_s19 }
   0x8   : > { %p26_p1 = scmp.eq.s32.totalorder %s25_s26, 0  ;;  %p36_p2 = scmp.eq.s32.totalorder %s675_s21, 0 }
   0x9   : > { %p41_p3 = scmp.ne.s32.totalorder %s667_s19, %s663_s18  ;;  %p42_p4 = scmp.eq.s32.totalorder %s732_s22, 0 }
   0xa   : > { %s748_s27 = scalar_select %p26_p1, %s671_s20, %s28_s25  }
   0xb   : > { %p750_p5 = por %p36_p2, %p35_p0  ;;  %p754_p6 = por %p42_p4, %p41_p3 }
   0xc   : > { %p149_p7 = scmp.eq.s32.totalorder %s732_s22, 1  ;;  %p155_p8 = scmp.eq.s32.totalorder %s505_s23, 1 }
   0xd   : > { %p536_p10 = scmp.lt.s32.totalorder %s675_s21, 2  ;;  %s187_s7 = sand.u32 1, %s671_s20  }
   0xe   : > { %p761_p11 = por %p149_p7, %p35_p0  ;;  %p765_p12 = por %p155_p8, %p41_p3 }
   0xf   : > { %s522_s8 = sshll.u32 %s675_s21, 7  ;;  %s508_s9 = sshll.u32 %s187_s7, 3 }
  0x10   : > { %s913_s30 = scalar_select %p761_p11, 1, 0 }
  0x11   : > { %s914_s6 = scalar_select %p765_p12, 1, 0 }
  0x12   : > { %s774_s12 = scalar_lea.hbm %s904_s0, %s522_s8  ;;  %s191_s13 = scalar_lea.vmem [#allocation2], %s508_s9 }
  0x13   : > { %s199_s14 = sshll.u32 %s191_s13, 4  ;;  %p778_p13 = pnand %p536_p10, %p750_p5  ;;  %s782_s14 = int_to_ptr.vmem [resolvable:$true] %s199_s14 }
  0x14   : > { %s188_s16 = scalar_lea.sflag [#allocation3], %s187_s7  ;;  %s579_s17 = scalar_lea.hbm %s774_s12, 128 }
  0x15   : > { %p580_p2 = scmp.ne.s32.totalorder %s774_s12, %s579_s17  ;;  %p581_p3 = pneg %p778_p13 }
  0x16   : > { %s584_s26 = scalar_lea.hbm %s904_s0, 256  ;;  %p585_p5 = scmp.lt.u32.totalorder %s774_s12, %s904_s0 }
  0x17   : > { %p582_p4 = pnand %p581_p3, %p580_p2  ;;  %p586_p8 = scmp.lt.u32.totalorder %s584_s26, %s579_s17 }
  0x18   : > { %p588_p9 = scmp.lt.u32.totalorder %s579_s17, %s774_s12 }
  0x19   : > { %p583_p7 = pneg %p582_p4  ;;  %p587_p10 = por %p586_p8, %p585_p5 }
  0x1b   : > { %p589_p0 = por %p588_p9, %p587_p10 }
  0x1d   : > { %p590_p1 = pnand %p589_p0, %p583_p7 }
  0x1f   : > { %593 = shalt.err (!%p590_p1)
}
  0x20   : > { %s594_s7 = scalar_lea.vmem %s782_s14, 128  ;;  %s677_s9 = smov [#allocation2]  }
  0x21   : > { %p595_p2 = scmp.ne.s32.totalorder %s782_s14, %s594_s7  ;;  %s599_s10 = sshll.u32 %s677_s9, 4  ;;  %s600_s10 = int_to_ptr.vmem [resolvable:$false] %s599_s10 }
  0x22   : > { %s601_s11 = scalar_lea.vmem %s600_s10, 256  ;;  %p602_p11 = scmp.lt.s32.totalorder %s782_s14, %s600_s10 }
  0x23   : > { %p597_p4 = pnand %p595_p2, %p581_p3  ;;  %p603_p5 = scmp.lt.s32.totalorder %s601_s11, %s594_s7 }
  0x25   : > { %p598_p12 = pneg %p597_p4  ;;  %p604_p8 = por %p603_p5, %p602_p11 }
  0x27   : > { %p605_p9 = pnand %p604_p8, %p598_p12 }
  0x29   : > { %608 = shalt.err (!%p605_p9)
}
  0x2a   : > { %531 = dma.hbm_to_vmem [thread:$0]  (!%p778_p13), %s774_s12, 128, %s782_s14, %s188_s16  }
  0x2b   : > { %p916_p0 = scmp.lt.s32.totalorder %s675_s21, 3  ;;  %p917_p1 = scmp.ge.s32.totalorder %s675_s21, 1 }
  0x2d   : > { %p205_p3 = pnand %p917_p1, %p916_p0 }
  0x2e   : > { %s816_s13 = sand.u32 (!%p205_p3), 1, %s667_s19  }
  0x2f   : > { %208 = sbr.rel (%p205_p3) target bundleno = 949 (0x3b5), region = 40  ;;  %s512_s17 = sshll.u32 (!%p205_p3), %s816_s13, 3 }
  0x30   : > { %s211_s23 = scalar_lea.sflag (!%p205_p3), [#allocation3], %s816_s13  ;;  %s214_s15 = scalar_lea.vmem (!%p205_p3), [#allocation2], %s512_s17 }
  0x36   : > { %654 = dma.done.wait (%p754_p6), %s211_s23, 128  }
  0x37   : > { %656 = vsyncadd (%p754_p6), %s211_s23, 4294967168  ;;  %v255_v0 = vlaneseq  ;;  %vm245_vm0 = vcmask 1043456   ;;  %v829_v3 = vld [vmem:[%s214_s15] sm:$0xff]  ;;  %v678_v12 = vmov 0   ;;  %vm291_vm1 = vcmask 1041409   ;;  %s523_s7 = sshll.u32 %s732_s22, 7 }
  0x38   : > { %v252_v4 = vld [vmem:[%s905_s1] sm:$0x3]  ;;  %v243_v5 = vcombine.high %v829_v3, %v829_v3  ;;  %v246_v6 = vsel %vm245_vm0, %v829_v3, 0.0  ;;  %572 = vset.pattern.permute.xlu1 %v678_v12  ;;  %573 = vset.pattern.permute.xlu0 %v678_v12  ;;  %vm294_vm2 = vcmask 25600   ;;  %vm380_vm3 = vcmask 1042434   ;;  %s240_s9 = scalar_lea.vmem [#allocation5], %s512_s17  ;;  %s860_s15 = scalar_lea.hbm %s909_s5, %s523_s7 }
  0x39   : > { %v826_v1 = vshrl.u32 %v255_v0, 7  ;;  %v514_v19 = vld [vmem:[%s906_s2] ss:$0 sm:$0xff]  ;;  %v282_v27 = vand.u32 127, %v255_v0  ;;  %vm382_vm4 = vcmask 1043459   ;;  %vm385_vm5 = vcmask 11264  }
  0x3a   : > { %v247_v8 = vsel %vm245_vm0, %v243_v5, 0.0  ;;  %v253_v20 = vld [vmem:[%s907_s3] sm:$0xf]  ;;  %v679_v5 = vmov 839922192   ;;  %s435_s10 = sshll.u32 %s240_s9, 4  ;;  %s862_s10 = int_to_ptr.vmem [resolvable:$true] %s435_s10 }
  0x3b   : > { %v264_v2 = vsub.s32 1, %v826_v1  ;;  %v248_v9 = vadd.f32 %v247_v8, %v246_v6  ;;  %v257_v10 = vsub.s32 0, %v826_v1  ;;  %v327_v23 = vsub.s32 2, %v826_v1  ;;  %v515_v47 = vld [vmem:[%s908_s4] ss:$0 sm:$0xff]  ;;  %s421_s12 = scalar_lea.sflag [#allocation4], %s816_s13 }
  0x3c   : > { %v334_v25 = vsub.s32 3, %v826_v1  ;;  %v285_v29 = vsub.s32 %v282_v27, %v826_v1  ;;  %v411_v6 = vunpack.c.l.s4 %v679_v5  ;;  %s609_s14 = scalar_lea.vmem %s862_s10, 128  ;;  %p918_p11 = scmp.ne.s32.totalorder %s913_s30, 0 }
  0x3d   : > { %v265_v7 = vrot.slane %v252_v4, %v264_v2  ;;  %249 = vadd.xlane.f32.xlu0 %v248_v9  ;;  %v258_v11 = vrot.slane %v252_v4, %v257_v10  ;;  %v314_v21 = vrot.slane %v253_v20, %v257_v10  ;;  %v321_v22 = vrot.slane %v253_v20, %v264_v2  ;;  %p610_p6 = scmp.ne.s32.totalorder %s862_s10, %s609_s14  ;;  %s680_s22 = smov [#allocation5]  }
  0x3e   : > { %v328_v24 = vrot.slane %v253_v20, %v327_v23  ;;  %v335_v26 = vrot.slane %v253_v20, %v334_v25  ;;  %s613_s17 = sshll.u32 %s680_s22, 4  ;;  %s614_s17 = int_to_ptr.vmem [resolvable:$false] %s613_s17 }
  0x3f   : > { %267 = vbcast.lane.b32.xlu1 %v265_v7, 256  ;;  %v412_v7 = vunpack.c.0.s8 %v411_v6  ;;  %p611_p12 = pnand %p610_p6, %p918_p11  ;;  %s615_s29 = scalar_lea.vmem %s614_s17, 256 }
  0x40   : > { %p616_p7 = scmp.lt.s32.totalorder %s862_s10, %s614_s17  ;;  %p617_p10 = scmp.lt.s32.totalorder %s615_s29, %s609_s14 }
  0x41   : > { %v415_v8 = vsub.s32 %v412_v7, %v826_v1  ;;  %p612_p13 = pneg %p611_p12 }
  0x42   : > { %p618_p2 = por %p617_p10, %p616_p7 }
  0x44   : > { %p619_p4 = pnand %p618_p2, %p612_p13 }
  0x53   : > { %260 = vbcast.lane.b32.xlu0 %v258_v11, 256 }
  0x57   : > { %305 = vbcast.lane.b32.xlu0 %v514_v19, 256 }
  0x5b   : > { %316 = vbcast.lane.b32.xlu0 %v314_v21, 256 }
  0x5f   : > { %323 = vbcast.lane.b32.xlu0 %v321_v22, 256 }
  0x63   : > { %330 = vbcast.lane.b32.xlu0 %v328_v24, 256 }
  0x67   : > { %337 = vbcast.lane.b32.xlu0 %v335_v26, 256 }
  0xb1   : > { %v268_v17 = vpop.permute.xlu1 %267 }
  0xca   : > { %v250_v13 = vpop.xlane.xlu0 %249 }
  0xcb   : > { %v251_v14 = vmul.f32 0.00390625, %v250_v13 }
  0xcd   : > { %v272_v18 = vmul.f32 %v268_v17, %v251_v14 }
  0xce   : > { %v261_v15 = vpop.permute.xlu0 %260 }
  0xcf   : > { %v271_v16 = vmul.f32 %v261_v15, %v251_v14 }
  0xd1   : > { %276 = vperm.xlu1 %572, %v271_v16  }
  0xd2   : > { %v306_v35 = vpop.permute.xlu0 %305 }
  0xd5   : > { %279 = vperm.xlu1 %572, %v272_v18  }
  0xd6   : > { %v317_v36 = vpop.permute.xlu0 %316 }
  0xda   : > { %v324_v37 = vpop.permute.xlu0 %323 }
  0xde   : > { %v331_v41 = vpop.permute.xlu0 %330 }
  0xe2   : > { %v338_v45 = vpop.permute.xlu0 %337 }
 0x150   : > { %v277_v28 = vpop.permute.xlu1 %276 }
 0x151   : > { %v286_v31 = vrot.slane %v277_v28, %v285_v29 }
 0x154   : > { %v280_v30 = vpop.permute.xlu1 %279 }
 0x155   : > { %v290_v32 = vrot.slane %v280_v30, %v285_v29 }
 0x157   : > { %v292_v33 = vsel %vm291_vm1, %v290_v32, %v286_v31 }
 0x158   : > { %v295_v34 = vsel %vm294_vm2, %v292_v33, 0.0 }
 0x159   : > { %296 = vadd.xlane.f32.xlu1 %v295_v34 }
 0x1e6   : > { %v297_v38 = vpop.xlane.xlu1 %296 }
 0x1e7   : > { %v308_v39 = vadd.f32 %v306_v35, %v297_v38 }
 0x1e9   : > { %v309_v40 = vmax.f32 %v308_v39, 0.0 }
 0x1eb   : > { %v343_v42 = vmul.f32 %v317_v36, %v309_v40  ;;  %v344_v43 = vmul.f32 %v324_v37, %v309_v40  ;;  %v345_v44 = vmul.f32 %v331_v41, %v309_v40  ;;  %v346_v46 = vmul.f32 %v338_v45, %v309_v40 }
 0x1ed   : > { %352 = vperm.xlu0 %573, %v343_v42   ;;  %355 = vperm.xlu1 %572, %v344_v43  }
 0x1f1   : > { %358 = vperm.xlu0 %573, %v345_v44   ;;  %396 = vbcast.lane.b32.xlu1 %v515_v47, 256 }
 0x1f5   : > { %361 = vperm.xlu0 %573, %v346_v46  }
 0x26c   : > { %v353_v48 = vpop.permute.xlu0 %352  ;;  %v356_v49 = vpop.permute.xlu1 %355 }
 0x26d   : > { %v370_v51 = vrot.slane %v356_v49, %v285_v29  ;;  %v366_v52 = vrot.slane %v353_v48, %v285_v29 }
 0x26f   : > { %v379_v55 = vsel %vm291_vm1, %v370_v51, %v366_v52 }
 0x270   : > { %v359_v50 = vpop.permute.xlu0 %358  ;;  %v397_v60 = vpop.permute.xlu1 %396 }
 0x271   : > { %v374_v53 = vrot.slane %v359_v50, %v285_v29 }
 0x273   : > { %v381_v57 = vsel %vm380_vm3, %v374_v53, %v379_v55 }
 0x274   : > { %v362_v54 = vpop.permute.xlu0 %361 }
 0x275   : > { %v378_v56 = vrot.slane %v362_v54, %v285_v29 }
 0x277   : > { %v383_v58 = vsel %vm382_vm4, %v378_v56, %v381_v57 }
 0x278   : > { %v386_v59 = vsel %vm385_vm5, %v383_v58, 0.0 }
 0x279   : > { %387 = vadd.xlane.f32.xlu0 %v386_v59 }
 0x306   : > { %v388_v61 = vpop.xlane.xlu0 %387 }
 0x307   : > { %v399_v62 = vadd.f32 %v397_v60, %v388_v61 }
 0x309   : > { %v516_v63 = vmul.f32 -1.442695, %v399_v62 }
 0x30b   : > { %575 = vpow2.f32 %v516_v63 }
 0x315   : > { %v576_v0 = vpop.eup %575 }
 0x316   : > { %v403_v2 = vadd.f32 1.0, %v576_v0 }
 0x318   : > { %577 = vrcp.f32 %v403_v2 }
 0x322   : > { %v578_v4 = vpop.eup %577 }
 0x323   : > { %408 = vperm.xlu1 %572, %v578_v4  }
 0x3a2   : > { %v409_v9 = vpop.permute.xlu1 %408 }
 0x3a3   : > { %v416_v10 = vrot.slane %v409_v9, %v415_v8 }
 0x3a5   : > { %v418_v11 = vmul.f32 %v416_v10, %v829_v3 }
 0x3a7   : > { %419 = vst [vmem:[%s240_s9] sm:$0xff] %v418_v11 }
 0x3a8   : > { %622 = shalt.err (!%p619_p4)
}
 0x3a9   : > { %s623_s13 = scalar_lea.hbm %s860_s15, 128  ;;  %s627_s26 = scalar_lea.hbm %s909_s5, 256 }
 0x3aa   : > { %p624_p5 = scmp.ne.s32.totalorder %s860_s15, %s623_s13  ;;  %p628_p0 = scmp.lt.u32.totalorder %s860_s15, %s909_s5 }
 0x3ab   : > { %p629_p1 = scmp.lt.u32.totalorder %s627_s26, %s623_s13  ;;  %p631_p6 = scmp.lt.u32.totalorder %s623_s13, %s860_s15 }
 0x3ac   : > { %p625_p8 = pnand %p624_p5, %p918_p11 }
 0x3ad   : > { %p630_p3 = por %p629_p1, %p628_p0 }
 0x3ae   : > { %p626_p9 = pneg %p625_p8 }
 0x3af   : > { %p632_p12 = por %p631_p6, %p630_p3 }
 0x3b1   : > { %p633_p13 = pnand %p632_p12, %p626_p9 }
 0x3b3   : > { %636 = shalt.err (!%p633_p13)
}
 0x3b4   : > { %526 = dma.vmem_to_hbm [thread:$0]  (%p918_p11), %s862_s10, 128, %s860_s15, %s421_s12  }
 0x3b5 PF: > { %s447_s7 = sand.u32 1, %s663_s18   ;;  %p919_p7 = scmp.ne.s32.totalorder %s914_s6, 0 }
 0x3b6   : > { %p920_p10 = scmp.ge.s32.totalorder %s675_s21, 2  ;;  %s448_s9 = scalar_lea.sflag [#allocation4], %s447_s7 }
 0x3b8   : > { %p533_p2 = pnand %p920_p10, %p919_p7 }
 0x3ba   : > { %658 = dma.done.wait (!%p533_p2), %s448_s9, 128  }
 0x3bb   : > { %660 = vsyncadd (!%p533_p2), %s448_s9, 4294967168  ;;  %p18_p4 = scmp.ge.s32.totalorder %s736_s24, 4   ;;  %s921_s18 = smov %s667_s19 }
 0x3bc   : > { %s922_s19 = smov %s671_s20  ;;  %s923_s20 = smov %s748_s27 }
 0x3bd   : > { %s924_s21 = smov %s736_s24  ;;  %20 = sbr.rel (!%p18_p4) target bundleno = 5 (0x5), region = 85 }
 0x3c4   :  { %453 = vsyncpa [#allocation3], 1 }
 0x3c5   :  { %455 = vsyncpa [#allocation3 + $0x1], 1 }
 0x3c6   :  { %456 = vsyncpa [#allocation4], 1 }
 0x3c7   :  { %458 = vsyncpa [#allocation4 + $0x1], 1 }

</bundles_post_ra>
